<compile_context>
chip_gen: v5e
topology: v5e:2x2
jax: 0.10.0
libtpu: 0.0.40
codegen_flags: <defaults>
</compile_context>

<pallas_src>
import jax
import jax.numpy as jnp
from jax.experimental import pallas as pl
from jax.experimental.pallas import tpu as pltpu


def _tree_sum_slabs(y, M, D_out):
    """Pairwise-sum the M lane-aligned D_out-wide slabs of y (static slices)."""
    slabs = [y[:, m * D_out:(m + 1) * D_out] for m in range(M)]
    while len(slabs) > 1:
        nxt = [slabs[i] + slabs[i + 1] for i in range(0, len(slabs) - 1, 2)]
        if len(slabs) % 2:
            nxt.append(slabs[-1])
        slabs = nxt
    return slabs[0]


def make_model_aggregator(W, b):
    """Builds mean_m(relu(x @ W[m] + b[m])) with weights prepared ONCE.

    W : [M, D_in, D_out] float32
    b : [M, D_out]       float32
    Returns a jitted callable:  x [B, D_in] f32 -> [B, D_out] f32.
    """
    M, D_in, D_out = W.shape

    # One-time layout transform: collapse the model axis into M contiguous
    # D_out-wide lane slabs; bias laid out in the same slab order.  Done here
    # (init time), NOT per call.
    W_bf = jnp.transpose(W, (1, 0, 2)).reshape(D_in, M * D_out).astype(jnp.bfloat16)
    b_wide = b.reshape(1, M * D_out).astype(jnp.float32)

    inv_m = 1.0 / M  # Python literal -> folded into the kernel

    def kernel(x_ref, w_ref, b_ref, o_ref):
        # In-kernel bf16 cast of x (free under the MXU), single wide MXU push:
        # (B, D_in) x (D_in, M*D_out) -> f32 (B, M*D_out)
        x_bf = x_ref[...].astype(jnp.bfloat16)
        y = jnp.dot(x_bf, w_ref[...], preferred_element_type=jnp.float32)
        # bias + clamp(0) in f32 (v5e-safe elementwise path)
        y = jnp.maximum(y + b_ref[...], 0.0)
        # mean over the model axis == tree-sum of M lane-aligned slabs * 1/M
        acc = _tree_sum_slabs(y, M, D_out)
        o_ref[...] = (acc * inv_m).astype(o_ref.dtype)

    vmem_spec = pl.BlockSpec(memory_space=pltpu.MemorySpace.VMEM)

    def _call(x):
        B = x.shape[0]
        flops = 2 * B * D_in * M * D_out
        bytes_accessed = (
            B * D_in * 4            # x (f32 in)
            + D_in * M * D_out * 2  # W (bf16)
            + M * D_out * 4         # bias (f32)
            + B * D_out * 4         # out (f32)
        )
        return pl.pallas_call(
            kernel,
            out_shape=jax.ShapeDtypeStruct((B, D_out), jnp.float32),
            in_specs=[vmem_spec, vmem_spec, vmem_spec],
            out_specs=vmem_spec,
            cost_estimate=pl.CostEstimate(
                flops=flops, transcendentals=0, bytes_accessed=bytes_accessed
            ),
        )(x, W_bf, b_wide)

    return jax.jit(_call)


def model_aggregator_ref(x, W, b):
    # pure-JAX reference: stack([m(x) for m in models], -1).clamp(0).mean(-1)
    outs = jnp.einsum("bi,mio->bom", x, W) + jnp.transpose(b)[None, :, :]
    return jnp.maximum(outs, 0.0).mean(-1)


if __name__ == "__main__":
    B, D_in, D_out, M = 8, 32, 128, 3

    key = jax.random.PRNGKey(0)
    kx, kw, kb = jax.random.split(key, 3)
    x = jax.random.normal(kx, (B, D_in), dtype=jnp.float32)
    W = jax.random.normal(kw, (M, D_in, D_out), dtype=jnp.float32) / jnp.sqrt(D_in)
    b = jax.random.normal(kb, (M, D_out), dtype=jnp.float32) * 0.1

    aggregator = make_model_aggregator(W, b)   # weight prep happens once here
    out = aggregator(x)
    out = jax.block_until_ready(out)

    ref = model_aggregator_ref(x, W, b)
    assert out.shape == (B, D_out)
    # Tolerance accounts for bf16 matmul operands (f32 accumulation) vs the
    # all-f32 reference.
    assert jnp.allclose(out, ref, atol=5e-2, rtol=5e-2)

    print("KERNEL_OK")
</pallas_src>

<mosaic_0001>
module attributes {stable_mosaic.version = 11 : i64} {
  func.func @kernel(%arg0: memref<8x32xf32, #tpu.memory_space<vmem>>, %arg1: memref<32x384xbf16, #tpu.memory_space<vmem>>, %arg2: memref<1x384xf32, #tpu.memory_space<vmem>>, %arg3: memref<8x128xf32, #tpu.memory_space<vmem>>) attributes {dimension_semantics = [], scalar_prefetch = 0 : i64, scratch_operands = 0 : i64, tpu.core_type = #tpu.core_type<tc>} {
    %c0 = arith.constant 0 : index
    %c0_0 = arith.constant 0 : index
    %0 = vector.load %arg0[%c0, %c0_0] : memref<8x32xf32, #tpu.memory_space<vmem>>, vector<8x32xf32>
    %1 = arith.truncf %0 : vector<8x32xf32> to vector<8x32xbf16>
    %c0_1 = arith.constant 0 : index
    %c0_2 = arith.constant 0 : index
    %2 = vector.load %arg1[%c0_1, %c0_2] : memref<32x384xbf16, #tpu.memory_space<vmem>>, vector<32x384xbf16>
    %cst = arith.constant dense<0.000000e+00> : vector<8x384xf32>
    %3 = tpu.matmul %1, %2, %cst {dimension_numbers = #tpu.dot_dimension_numbers<[1], [0], [0], [1], [0, 0, 1, 1], [], []>} : vector<8x32xbf16>, vector<32x384xbf16>, vector<8x384xf32> -> vector<8x384xf32>
    %c0_3 = arith.constant 0 : index
    %c0_4 = arith.constant 0 : index
    %4 = vector.load %arg2[%c0_3, %c0_4] : memref<1x384xf32, #tpu.memory_space<vmem>>, vector<1x384xf32>
    %5 = vector.broadcast %4 : vector<1x384xf32> to vector<8x384xf32>
    %6 = arith.addf %3, %5 : vector<8x384xf32>
    %cst_5 = arith.constant 0.000000e+00 : f32
    %7 = vector.broadcast %cst_5 : f32 to vector<8x384xf32>
    %8 = arith.maximumf %6, %7 : vector<8x384xf32>
    %9 = vector.extract_strided_slice %8 {offsets = [0, 0], sizes = [8, 128], strides = [1, 1]} : vector<8x384xf32> to vector<8x128xf32>
    %10 = vector.extract_strided_slice %8 {offsets = [0, 128], sizes = [8, 128], strides = [1, 1]} : vector<8x384xf32> to vector<8x128xf32>
    %11 = vector.extract_strided_slice %8 {offsets = [0, 256], sizes = [8, 128], strides = [1, 1]} : vector<8x384xf32> to vector<8x128xf32>
    %12 = arith.addf %9, %10 : vector<8x128xf32>
    %13 = arith.addf %12, %11 : vector<8x128xf32>
    %cst_6 = arith.constant 0.333333343 : f32
    %14 = vector.broadcast %cst_6 : f32 to vector<8x128xf32>
    %15 = arith.mulf %13, %14 : vector<8x128xf32>
    %c0_7 = arith.constant 0 : index
    %c0_8 = arith.constant 0 : index
    %16 = vector.load %arg3[%c0_7, %c0_8] : memref<8x128xf32, #tpu.memory_space<vmem>>, vector<8x128xf32>
    tpu.vector_store %arg3[%c0_7, %c0_8], %15 {strides = array<i32>} : memref<8x128xf32, #tpu.memory_space<vmem>>, vector<8x128xf32>,
    return
  }
}

</mosaic_0001>

<bundles_post_ra>
// kernel: _call.1
= control target key start
LH: loop header
LB: loop body
LE: loop exit
PB: predicated region body
PF: predicated region fallthrough
CT: control target
= control target key end

     0   :  { %8 = vsyncpa [#allocation3], 0  ;;  %s356_s0 = inlined_call_operand.hbm [shape: f32[8,32], index: 0, kind: input, shape index: {}]   ;;  %s357_s1 = inlined_call_operand.hbm [shape: bf16[32,384], index: 1, kind: input, shape index: {}]   ;;  %s358_s2 = inlined_call_operand.hbm [shape: f32[1,384], index: 2, kind: input, shape index: {}]   ;;  %s359_s3 = inlined_call_operand.hbm [shape: f32[8,128], index: 3, kind: output, shape index: {}]  }
   0x1   :  { %9 = vsyncpa [#allocation6], 0  ;;  %s26_s14 = sshll.u32 %s357_s1, 4  ;;  %s27_s14 = int_to_ptr.hbm [resolvable:$true] %s26_s14 }
   0x2   :  { %10 = vsyncpa [#allocation4], 0  ;;  %s318_s15 = smov [#allocation5]   ;;  %s16_s19 = sshll.u32 %s356_s0, 4  ;;  %s17_s19 = int_to_ptr.hbm [resolvable:$true] %s16_s19 }
   0x3   :  { %s28_s16 = sshll.u32 %s318_s15, 4  ;;  %s319_s20 = smov 192   ;;  %s29_s16 = int_to_ptr.vmem [resolvable:$true] %s28_s16 }
   0x4   :  { %s320_s21 = smov 12   ;;  %s321_s22 = smov [#allocation2]  }
   0x5   :  { %34 = dma.hbm_to_vmem [thread:$0]  %s27_s14, 768, %s29_s16, [#allocation6], %s319_s20, %s319_s20, %s320_s21  }
   0x6   :  { %s18_s23 = sshll.u32 %s321_s22, 4  ;;  %s40_s26 = sshll.u32 %s358_s2, 4  ;;  %s19_s23 = int_to_ptr.vmem [resolvable:$true] %s18_s23  ;;  %s41_s26 = int_to_ptr.hbm [resolvable:$true] %s40_s26 }
   0x7   :  { %21 = dma.hbm_to_vmem [thread:$0]  %s17_s19, 128, %s19_s23, [#allocation3]  }
   0x8   :  { %s322_s1 = smov [#allocation7]  }
   0x9   :  { %s42_s27 = sshll.u32 %s322_s1, 4  ;;  %s43_s27 = int_to_ptr.vmem [resolvable:$true] %s42_s27 }
   0xa   :  { %45 = dma.hbm_to_vmem [thread:$0]  %s41_s26, 48, %s43_s27, [#allocation6]  }
   0xb   :  { %312 = dma.done.wait [#allocation3], 128  }
   0xc   :  { %313 = vsyncadd [#allocation3], 4294967168 }
   0xd   :  { %314 = dma.done.wait [#allocation6], 816  }
   0xe   :  { %315 = vsyncadd [#allocation6], 4294966480  ;;  %v191_v0 = vld [vmem:[#allocation5 + $0x18] sm:$0xf]  ;;  %v208_v1 = vld [vmem:[#allocation5 + $0x20] sm:$0xf0] }
   0xf   :  { %v207_v2 = vld [vmem:[#allocation5 + $0x1c] sm:$0xf]  ;;  %v192_v3 = vor.u32 %v208_v1, %v191_v0  ;;  %v193_v4 = vld [vmem:[#allocation5 + $0x24] sm:$0xf0]  ;;  %v199_v5 = vld [vmem:[#allocation5 + $0x20] sm:$0xf] }
  0x10   :  { %v209_v6 = vld [vmem:[#allocation5 + $0x28] sm:$0xf0]  ;;  %v196_v7 = vor.u32 %v207_v2, %v193_v4  ;;  %v179_v9 = vld [vmem:[#allocation5] sm:$0xf]  ;;  %v204_v11 = vld [vmem:[#allocation5 + $0x4] sm:$0xf] }
  0x11   :  { %v200_v8 = vor.u32 %v209_v6, %v199_v5  ;;  %v205_v10 = vld [vmem:[#allocation5 + $0x8] sm:$0xf0]  ;;  %119 = vmatpush.bf16.msra.mxu0 %v192_v3  ;;  %v181_v13 = vld [vmem:[#allocation5 + $0xc] sm:$0xf0]  ;;  %v187_v14 = vld [vmem:[#allocation5 + $0x8] sm:$0xf] }
  0x12   :  { %v180_v12 = vor.u32 %v205_v10, %v179_v9  ;;  %v206_v15 = vld [vmem:[#allocation5 + $0x10] sm:$0xf0]  ;;  %132 = vmatpush.bf16.msra.mxu1 %v196_v7  ;;  %v184_v16 = vor.u32 %v204_v11, %v181_v13  ;;  %v59_v18 = vld [vmem:[#allocation2] sm:$0xff]  ;;  %vm109_vm0 = vcmask 261120   ;;  %v69_v20 = vld [vmem:[#allocation7] sm:$0x7] }
  0x13   :  { %145 = vmatpush.bf16.msra.mxu2 %v200_v8  ;;  %v188_v17 = vor.u32 %v206_v15, %v187_v14  ;;  %v60_v19 = vpack.c.bf16 %v59_v18, %v59_v18  ;;  %v71_v21 = vperm.slane %v69_v20, 0  ;;  %v72_v22 = vperm.slane %v69_v20, 1  ;;  %s323_s0 = smov [#allocation8]   ;;  %s166_s30 = sshll.u32 %s359_s3, 4  ;;  %s167_s30 = int_to_ptr.hbm [resolvable:$true] %s166_s30 }
  0x14   :  { %v73_v29 = vperm.slane %v69_v20, 2  ;;  %s164_s2 = sshll.u32 %s323_s0, 4  ;;  %s165_s2 = int_to_ptr.vmem [resolvable:$true] %s164_s2 }
  0x15   :  { %120 = vmatpush.bf16.msra.mxu0 %v180_v12 }
  0x16   :  { %133 = vmatpush.bf16.msra.mxu1 %v184_v16 }
  0x17   :  { %146 = vmatpush.bf16.msra.mxu2 %v188_v17 }
  0x18   :  { %201 = vmatmul.msk.bf16.vlgmr.msra.gmra.mxu0 %vm109_vm0, %v60_v19 }
  0x19   :  { %202 = vmatmul.msk.bf16.vlgmr.msra.gmra.mxu1 %vm109_vm0, %v60_v19 }
  0x1a   :  { %203 = vmatmul.msk.bf16.vlgmr.msra.gmra.mxu2 %vm109_vm0, %v60_v19 }
  0x95   :  { %v122_v23 = vpop.f32.mrf.mxu0 }
  0x96   :  { %v123_v24 = vadd.f32 %v122_v23, %v71_v21  ;;  %v135_v25 = vpop.f32.mrf.mxu1 }
  0x97   :  { %v136_v26 = vadd.f32 %v135_v25, %v72_v22 }
  0x98   :  { %v152_v27 = vmax.f32 %v123_v24, 0.0 }
  0x99   :  { %v153_v28 = vmax.f32 %v136_v26, 0.0 }
  0x9b   :  { %v155_v31 = vadd.f32 %v153_v28, %v152_v27 }
  0x9d   :  { %v148_v30 = vpop.f32.mrf.mxu2  ;;  %v124_v33 = vpop.f32.mrf.mxu0 }
  0x9e   :  { %v149_v32 = vadd.f32 %v148_v30, %v73_v29  ;;  %v137_v34 = vpop.f32.mrf.mxu1 }
  0xa0   :  { %v154_v35 = vmax.f32 %v149_v32, 0.0 }
  0xa2   :  { %v156_v36 = vadd.f32 %v155_v31, %v154_v35 }
  0xa4   :  { %v157_v37 = vmul.f32 0.33333334, %v156_v36 }
  0xa5   :  { %v150_v38 = vpop.f32.mrf.mxu2 }
  0xa6   :  { %158 = vst [vmem:[#allocation8] sm:$0xff] %v157_v37 }
  0xa7   :  { %169 = dma.vmem_to_hbm [thread:$0]  %s165_s2, 128, %s167_s30, [#allocation4]  }
  0xa8   :  { %316 = dma.done.wait [#allocation4], 128  }
  0xa9   :  { %317 = vsyncadd [#allocation4], 4294967168 }
  0xaa   :  { %174 = vsyncpa [#allocation3], 1 }
  0xab   :  { %175 = vsyncpa [#allocation6], 1 }
  0xac   :  { %176 = vsyncpa [#allocation4], 1 }

</bundles_post_ra>
